<compile_context>
chip_gen: v6e
topology: v6e:2x2x1
jax: 0.10.0
libtpu: 0.0.40
codegen_flags: <defaults>
</compile_context>

<pallas_src>
import jax
import jax.numpy as jnp
from jax.experimental import pallas as pl
from jax.experimental.pallas import tpu as pltpu


def _segment_embed_kernel(pos_ref, table_ref, out_ref):
    # pos_ref:   (tile_n, 1) int32, values in {0, 1}
    # table_ref: (2, d_pad) float embedding table (VMEM-resident across steps)
    # out_ref:   (tile_n, d_pad) float
    pos = pos_ref[...].astype(out_ref.dtype)                 # (tile_n, 1)
    row0 = table_ref[0, :][None, :]                          # (1, d_pad)
    diff = (table_ref[1, :] - table_ref[0, :])[None, :]      # (1, d_pad)
    # FMA-style blend on the VPU; broadcasts (tile_n,1) x (1,d_pad).
    out_ref[...] = row0 + pos * diff


def segment_embedding(pos, table, tile_n=1024):
    """pos: int array of shape (B, S) with values in {0, 1};
    table: (2, d) float embedding weights (nn.Embedding(2, d).weight).
    Returns (B, S, d) with the same dtype as `table`."""
    B, S = pos.shape
    num_rows, d = table.shape
    N = B * S

    # --- lane-dense output: pad embedding dim up to a multiple of 128 ---------
    d_pad = ((d + 127) // 128) * 128
    table_p = jnp.pad(table, ((0, 0), (0, d_pad - d))) if d_pad != d else table

    # --- row tiling ------------------------------------------------------------
    # Cap the tile so an output tile is ~<= 2 MiB (double-buffered in/out stays
    # well under the default scoped-VMEM limit even for large d).
    itemsize = jnp.dtype(table.dtype).itemsize
    target_tile_bytes = 2 * 1024 * 1024
    max_rows_by_vmem = max(8, (target_tile_bytes // (d_pad * itemsize)) // 8 * 8)
    tile_n = min(tile_n, max_rows_by_vmem)
    # Also clamp for tiny inputs; keep a multiple of 8 (sublanes).
    tile_n = min(tile_n, max(8, ((N + 7) // 8) * 8))
    grid_n = pl.cdiv(N, tile_n)
    n_pad = grid_n * tile_n

    pos_flat = pos.reshape(N).astype(jnp.int32)
    if n_pad != N:
        # Pad with index 0 (a valid row); padded rows are sliced off below.
        pos_flat = jnp.pad(pos_flat, (0, n_pad - N))
    pos_flat = pos_flat.reshape(n_pad, 1)

    # TODO(synk): torch nn.Embedding raises on out-of-range indices; here any
    # index is blended as-is (caller must guarantee segment ids are in {0, 1}).
    out_flat = pl.pallas_call(
        _segment_embed_kernel,
        out_shape=jax.ShapeDtypeStruct((n_pad, d_pad), table.dtype),
        grid_spec=pltpu.PrefetchScalarGridSpec(
            num_scalar_prefetch=0,
            grid=(grid_n,),
            in_specs=[
                # per-tile slice of the indices
                pl.BlockSpec((tile_n, 1), lambda i: (i, 0)),
                # tiny table: constant index_map -> stays resident in VMEM
                pl.BlockSpec((num_rows, d_pad), lambda i: (0, 0)),
            ],
            out_specs=pl.BlockSpec((tile_n, d_pad), lambda i: (i, 0)),
        ),
        compiler_params=pltpu.CompilerParams(
            # Row axis is independent: shards grid steps across both TCs on v7x.
            dimension_semantics=("parallel",),
        ),
    )(pos_flat, table_p)

    return out_flat[:N, :d].reshape(B, S, d)


if __name__ == "__main__":
    key = jax.random.PRNGKey(0)
    k_w, k_pos = jax.random.split(key)

    B, S, d = 2, 8, 32

    # Deterministic "nn.Embedding(2, d)" weight (torch default init is N(0,1)).
    table = jax.random.normal(k_w, (2, d), dtype=jnp.float32)
    # Segment ids in {0, 1}.
    pos = jax.random.randint(k_pos, (B, S), 0, 2, dtype=jnp.int32)

    out = segment_embedding(pos, table)
    out = jax.block_until_ready(out)

    # Reference: plain JAX gather (same semantics as torch Embedding lookup).
    ref = table[pos]
    assert out.shape == (B, S, d)
    assert jnp.allclose(out, ref), "mismatch vs reference gather"

    print("KERNEL_OK")
</pallas_src>

<mosaic_0001>
module attributes {stable_mosaic.version = 11 : i64} {
  func.func @_segment_embed_kernel(%arg0: i32, %arg1: memref<16x1xi32, #tpu.memory_space<vmem>>, %arg2: memref<2x128xf32, #tpu.memory_space<vmem>>, %arg3: memref<16x128xf32, #tpu.memory_space<vmem>>) attributes {dimension_semantics = [#tpu.dimension_semantics<parallel>], iteration_bounds = array<i64: 1>, scalar_prefetch = 0 : i64, scratch_operands = 0 : i64, tpu.core_type = #tpu.core_type<tc>, window_params = [{transform_indices = @transform_0, window_bounds = array<i64: 16, 1>}, {pipeline_mode = #tpu.pipeline_mode<synchronous>, transform_indices = @transform_1, window_bounds = array<i64: 2, 128>}, {transform_indices = @transform_2, window_bounds = array<i64: 16, 128>}]} {
    %c0 = arith.constant 0 : index
    %c0_0 = arith.constant 0 : index
    %0 = vector.load %arg1[%c0, %c0_0] : memref<16x1xi32, #tpu.memory_space<vmem>>, vector<16x1xi32>
    %1 = arith.sitofp %0 : vector<16x1xi32> to vector<16x1xf32>
    %c0_1 = arith.constant 0 : index
    %c0_2 = arith.constant 0 : index
    %2 = vector.load %arg2[%c0_1, %c0_2] : memref<2x128xf32, #tpu.memory_space<vmem>>, vector<1x128xf32>
    %3 = vector.shape_cast %2 : vector<1x128xf32> to vector<128xf32>
    %4 = vector.shape_cast %3 : vector<128xf32> to vector<1x128xf32>
    %c1 = arith.constant 1 : index
    %c0_3 = arith.constant 0 : index
    %5 = vector.load %arg2[%c1, %c0_3] : memref<2x128xf32, #tpu.memory_space<vmem>>, vector<1x128xf32>
    %6 = vector.shape_cast %5 : vector<1x128xf32> to vector<128xf32>
    %c0_4 = arith.constant 0 : index
    %c0_5 = arith.constant 0 : index
    %7 = vector.load %arg2[%c0_4, %c0_5] : memref<2x128xf32, #tpu.memory_space<vmem>>, vector<1x128xf32>
    %8 = vector.shape_cast %7 : vector<1x128xf32> to vector<128xf32>
    %9 = arith.subf %6, %8 : vector<128xf32>
    %10 = vector.shape_cast %9 : vector<128xf32> to vector<1x128xf32>
    %11 = vector.broadcast %1 : vector<16x1xf32> to vector<16x128xf32>
    %12 = vector.broadcast %10 : vector<1x128xf32> to vector<16x128xf32>
    %13 = arith.mulf %11, %12 : vector<16x128xf32>
    %14 = vector.broadcast %4 : vector<1x128xf32> to vector<16x128xf32>
    %15 = arith.addf %14, %13 : vector<16x128xf32>
    %c0_6 = arith.constant 0 : index
    %c0_7 = arith.constant 0 : index
    %16 = vector.load %arg3[%c0_6, %c0_7] : memref<16x128xf32, #tpu.memory_space<vmem>>, vector<16x128xf32>
    tpu.vector_store %arg3[%c0_6, %c0_7], %15 {strides = array<i32>} : memref<16x128xf32, #tpu.memory_space<vmem>>, vector<16x128xf32>,
    return
  }
  func.func @transform_0(%arg0: i32) -> (i32, i32) {
    %c0_i32 = arith.constant 0 : i32
    %c0_i32_0 = arith.constant 0 : i32
    return %arg0, %c0_i32 : i32, i32
  }
  func.func @transform_1(%arg0: i32) -> (i32, i32) {
    %c0_i32 = arith.constant 0 : i32
    %c0_i32_0 = arith.constant 0 : i32
    %c0_i32_1 = arith.constant 0 : i32
    return %c0_i32, %c0_i32_0 : i32, i32
  }
  func.func @transform_2(%arg0: i32) -> (i32, i32) {
    %c0_i32 = arith.constant 0 : i32
    %c0_i32_0 = arith.constant 0 : i32
    return %arg0, %c0_i32 : i32, i32
  }
}

</mosaic_0001>

<bundles_post_ra>
// kernel: tpu_custom_call.1
= control target key start
LH: loop header
LB: loop body
LE: loop exit
PB: predicated region body
PF: predicated region fallthrough
CT: control target
= control target key end

     0   :  { %v86_v2 = vmov 0   ;;  %s120_s0 = inlined_call_operand.vmem [shape: s32[16,1], index: 0, kind: input, shape index: {}]   ;;  %s121_s1 = inlined_call_operand.vmem [shape: f32[2,128], index: 1, kind: input, shape index: {}]   ;;  %s122_s2 = inlined_call_operand.hbm [shape: f32[16,128], index: 2, kind: output, shape index: {}]  }
   0x1   :  { %v12_v0 = vld [vmem:[%s120_s0] sm:$0xff]  ;;  %v13_v1 = vld [vmem:[%s120_s0 + $0x8] sm:$0xff]  ;;  %63 = vset.pattern.permute.xlu0 %v86_v2 }
   0x2   :  { %v14_v3 = vcvt.s32.f32 %v12_v0 }
   0x3   :  { %7 = vsyncpa [#allocation3], 0  ;;  %v15_v4 = vcvt.s32.f32 %v13_v1  ;;  %v29_v5 = vlaneseq  ;;  %v16_v7 = vld [vmem:[%s121_s1] sm:$0x1]  ;;  %v17_v8 = vld [vmem:[%s121_s1 + $0x1] sm:$0x1] }
   0x4   :  { %21 = vperm.xlu0 %63, %v14_v3   ;;  %v18_v9 = vsub.f32 %v17_v8, %v16_v7  ;;  %s87_s0 = smov [#allocation2]  }
   0x5   :  { %v30_v6 = vshrl.u32 %v29_v5, 7  ;;  %s48_s17 = sshll.u32 %s87_s0, 4  ;;  %s49_s17 = int_to_ptr.vmem [resolvable:$true] %s48_s17 }
   0x6   :  { %s64_s18 = scalar_lea.vmem %s49_s17, 256  ;;  %p69_p1 = scmp.lt.s32.totalorder %s49_s17, %s49_s17 }
   0x7   :  { %v31_v10 = vsub.s32 0, %v30_v6  ;;  %p65_p0 = scmp.ne.s32.totalorder %s49_s17, %s64_s18  ;;  %p70_p2 = scmp.lt.s32.totalorder %s64_s18, %s64_s18 }
   0x8   :  { %26 = vperm.xlu0 %63, %v15_v4  }
   0x9   :  { %v32_v11 = vrot.slane %v18_v9, %v31_v10  ;;  %v38_v12 = vrot.slane %v16_v7, %v31_v10  ;;  %p71_p3 = por %p70_p2, %p69_p1 }
   0xb   :  { %p72_p4 = pnand %p71_p3, %p65_p0 }
  0x7f   :  { %v22_v13 = vpop.permute.xlu0 %21 }
  0x80   :  { %v33_v14 = vmul.f32 %v32_v11, %v22_v13 }
  0x82   :  { %v39_v15 = vadd.f32 %v38_v12, %v33_v14 }
  0x83   :  { %v27_v16 = vpop.permute.xlu0 %26 }
  0x84   :  { %41 = vst [vmem:[#allocation2] sm:$0xff] %v39_v15  ;;  %v34_v17 = vmul.f32 %v32_v11, %v27_v16 }
  0x86   :  { %v40_v18 = vadd.f32 %v38_v12, %v34_v17 }
  0x88   :  { %42 = vst [vmem:[#allocation2 + $0x8] sm:$0xff] %v40_v18 }
  0x89   :  { %75 = shalt.err (!%p72_p4)
}
  0x8a   :  { %s88_s1 = smov 128   ;;  %s89_s19 = smov 8  }
  0x8b   :  { %54 = dma.vmem_to_hbm [thread:$0]  %s49_s17, 256, %s122_s2, [#allocation3], %s88_s1, %s88_s1, %s89_s19  }
  0x8c   :  { %84 = dma.done.wait [#allocation3], 256  }
  0x8d   :  { %85 = vsyncadd [#allocation3], 4294967040 }
  0x8e   :  { %58 = vsyncpa [#allocation3], 1 }

</bundles_post_ra>
